<compile_context>
chip_gen: v5e
topology: v5e:2x2
jax: 0.10.0
libtpu: 0.0.40
codegen_flags: <defaults>
</compile_context>

<pallas_src>
import functools

import jax
import jax.numpy as jnp
from jax.experimental import pallas as pl
from jax.experimental.pallas import tpu as pltpu


_LANE = 128     # feature dims padded to a multiple of the 128-lane vreg width
_SUBLANE = 8    # f32 sublane width: small batches padded to a multiple of this


def _round_up(n, m):
    return ((n + m - 1) // m) * m


def _fused_net_kernel(x_ref, w_ref, b_ref, out_ref, last_ref, *, n_blocks):
    """Single fused kernel for the whole block chain (one batch tile).

    x_ref:    (tile_m, P)       VMEM f32   padded input activations
    w_ref:    (n_blocks, P, P)  VMEM bf16  zero-padded, stacked weights (in,out)
    b_ref:    (n_blocks, P)     VMEM f32   zero-padded, stacked biases
    out_ref:  (tile_m, P)       VMEM f32   final block output (padded)
    last_ref: (tile_m, P)       VMEM f32   input to the final block (padded)

    The layer loop is unrolled at trace time; activations stay on-chip.
    Matmuls run bf16 x bf16 -> f32 on the MXU; bias-add/tanh stay f32.
    """
    h = x_ref[...]
    for i in range(n_blocks):
        if i == n_blocks - 1:
            # `last_hidden_layer` in Net.forward == input of the last block.
            last_ref[...] = h
        b = b_ref[pl.ds(i, 1), :]  # (1, P) f32, broadcasts over rows
        y = jnp.dot(h.astype(jnp.bfloat16), w_ref[i],
                    preferred_element_type=jnp.float32) + b
        if i < n_blocks - 1:
            y = jnp.tanh(y)  # hidden blocks: Linear+Tanh; final block: Linear
        h = y
    out_ref[...] = h


def prepare_params(params):
    """Pad & stack (w, b) pairs once at init time.

    Feature dims are zero-padded to a common lane-dense width P (multiple of
    128).  Zero padding is exact: padded columns stay 0 through bias-add and
    tanh, so valid columns match the unpadded model.  Weights are stored bf16
    (MXU-native); biases stay f32.
    """
    dims = [params[0][0].shape[0]] + [w.shape[1] for w, _ in params]
    P = _round_up(max(dims), _LANE)
    w_stack = jnp.stack(
        [jnp.zeros((P, P), jnp.float32).at[: w.shape[0], : w.shape[1]].set(w)
         for w, _ in params]
    ).astype(jnp.bfloat16)
    b_stack = jnp.stack(
        [jnp.zeros((P,), jnp.float32).at[: b.shape[0]].set(b)
         for _, b in params]
    )
    return w_stack, b_stack, tuple(dims), P


def make_net_forward(prepped, *, tile_m=256):
    """Returns a jitted forward mirroring Net.forward:
    x -> (final_output, input_to_last_block)."""
    w_stack, b_stack, dims, P = prepped
    n_blocks = w_stack.shape[0]
    d_in, d_last, d_out = dims[0], dims[-2], dims[-1]
    kernel = functools.partial(_fused_net_kernel, n_blocks=n_blocks)
    vmem = pltpu.MemorySpace.VMEM

    @jax.jit
    def forward(x):
        batch = x.shape[0]

        if batch <= tile_m:
            # Tiny batch: one grid-less launch, everything VMEM-resident.
            B_pad = _round_up(batch, _SUBLANE)
            x_pad = jnp.zeros((B_pad, P), jnp.float32).at[:batch, :d_in].set(x)
            out_pad, last_pad = pl.pallas_call(
                kernel,
                out_shape=(
                    jax.ShapeDtypeStruct((B_pad, P), jnp.float32),
                    jax.ShapeDtypeStruct((B_pad, P), jnp.float32),
                ),
                in_specs=[pl.BlockSpec(memory_space=vmem)] * 3,
                out_specs=(
                    pl.BlockSpec(memory_space=vmem),
                    pl.BlockSpec(memory_space=vmem),
                ),
            )(x_pad, w_stack, b_stack)
        else:
            # Large batch: grid over MXU-sized batch tiles; the constant
            # index_map keeps the weight/bias stacks VMEM-resident across
            # all grid steps (no per-tile re-DMA, single launch).
            B_pad = _round_up(batch, tile_m)
            x_pad = jnp.zeros((B_pad, P), jnp.float32).at[:batch, :d_in].set(x)
            out_pad, last_pad = pl.pallas_call(
                kernel,
                out_shape=(
                    jax.ShapeDtypeStruct((B_pad, P), jnp.float32),
                    jax.ShapeDtypeStruct((B_pad, P), jnp.float32),
                ),
                grid=(B_pad // tile_m,),
                in_specs=[
                    pl.BlockSpec((tile_m, P), lambda i: (i, 0)),
                    pl.BlockSpec((n_blocks, P, P), lambda i: (0, 0, 0)),
                    pl.BlockSpec((n_blocks, P), lambda i: (0, 0)),
                ],
                out_specs=(
                    pl.BlockSpec((tile_m, P), lambda i: (i, 0)),
                    pl.BlockSpec((tile_m, P), lambda i: (i, 0)),
                ),
                compiler_params=pltpu.CompilerParams(
                    dimension_semantics=("parallel",)),
            )(x_pad, w_stack, b_stack)

        out = out_pad[:batch, :d_out]
        last_hidden = last_pad[:batch, :d_last]
        return out, last_hidden

    return forward


def init_params(key, dims):
    """Deterministic synthetic parameters: block i is Linear(d_i -> d_{i+1}).

    Weights are stored as (in_features, out_features) so the kernel computes
    y = x @ W + b (equivalent to PyTorch Linear's x @ W_t.T + b)."""
    params = []
    for i in range(len(dims) - 1):
        key, kw, kb = jax.random.split(key, 3)
        scale = 1.0 / jnp.sqrt(jnp.float32(dims[i]))
        w = jax.random.uniform(
            kw, (dims[i], dims[i + 1]), jnp.float32, -scale, scale
        )
        b = jax.random.uniform(kb, (dims[i + 1],), jnp.float32, -scale, scale)
        params.append((w, b))
    return params


def _reference(x, params, emulate_bf16=True):
    """Pure-JAX reference of Net.forward (optionally with bf16 matmul inputs)."""
    ref = x
    ref_last = x
    for i, (w, b) in enumerate(params):
        ref_last = ref
        if emulate_bf16:
            ref = jnp.dot(ref.astype(jnp.bfloat16), w.astype(jnp.bfloat16),
                          preferred_element_type=jnp.float32) + b
        else:
            ref = ref @ w + b
        if i < len(params) - 1:
            ref = jnp.tanh(ref)
    return ref, ref_last


if __name__ == "__main__":
    key = jax.random.PRNGKey(0)
    key, kx = jax.random.split(key)

    dims = [16, 32, 32, 4]  # 3 blocks: 16->32 (tanh), 32->32 (tanh), 32->4
    params = init_params(key, dims)
    prepped = prepare_params(params)
    net_forward = make_net_forward(prepped, tile_m=256)

    # --- small batch: exercises the grid-less single-launch path -----------
    batch = 8
    x = jax.random.normal(kx, (batch, dims[0]), jnp.float32)
    out, last_hidden = net_forward(x)
    jax.block_until_ready((out, last_hidden))

    ref, ref_last = _reference(x, params, emulate_bf16=True)
    ref32, _ = _reference(x, params, emulate_bf16=False)

    assert out.shape == (batch, dims[-1])
    assert last_hidden.shape == (batch, dims[-2])
    assert jnp.allclose(out, ref, atol=1e-2, rtol=1e-2)
    assert jnp.allclose(last_hidden, ref_last, atol=1e-2, rtol=1e-2)
    # bf16-weight quantization stays within a loose bound of the f32 model.
    assert jnp.allclose(out, ref32, atol=5e-2, rtol=5e-2)

    # --- larger batch: exercises the batch-tiled grid path (weights stay
    # VMEM-resident across grid steps via the constant index_map) -----------
    key, kx2 = jax.random.split(key)
    batch2 = 384  # > tile_m and not a multiple of it -> pad path covered too
    x2 = jax.random.normal(kx2, (batch2, dims[0]), jnp.float32)
    out2, last2 = net_forward(x2)
    jax.block_until_ready((out2, last2))

    ref2, ref_last2 = _reference(x2, params, emulate_bf16=True)
    assert out2.shape == (batch2, dims[-1])
    assert last2.shape == (batch2, dims[-2])
    assert jnp.allclose(out2, ref2, atol=1e-2, rtol=1e-2)
    assert jnp.allclose(last2, ref_last2, atol=1e-2, rtol=1e-2)

    print("KERNEL_OK")
</pallas_src>

<mosaic_0001>
module attributes {stable_mosaic.version = 11 : i64} {
  func.func @_fused_net_kernel(%arg0: memref<8x128xf32, #tpu.memory_space<vmem>>, %arg1: memref<3x128x128xbf16, #tpu.memory_space<vmem>>, %arg2: memref<3x128xf32, #tpu.memory_space<vmem>>, %arg3: memref<8x128xf32, #tpu.memory_space<vmem>>, %arg4: memref<8x128xf32, #tpu.memory_space<vmem>>) attributes {dimension_semantics = [], scalar_prefetch = 0 : i64, scratch_operands = 0 : i64, tpu.core_type = #tpu.core_type<tc>} {
    %c0 = arith.constant 0 : index
    %c0_0 = arith.constant 0 : index
    %0 = vector.load %arg0[%c0, %c0_0] : memref<8x128xf32, #tpu.memory_space<vmem>>, vector<8x128xf32>
    %c0_1 = arith.constant 0 : index
    %c0_2 = arith.constant 0 : index
    %1 = vector.load %arg2[%c0_1, %c0_2] : memref<3x128xf32, #tpu.memory_space<vmem>>, vector<1x128xf32>
    %2 = arith.truncf %0 : vector<8x128xf32> to vector<8x128xbf16>
    %c0_3 = arith.constant 0 : index
    %c0_4 = arith.constant 0 : index
    %c0_5 = arith.constant 0 : index
    %3 = vector.load %arg1[%c0_3, %c0_4, %c0_5] : memref<3x128x128xbf16, #tpu.memory_space<vmem>>, vector<1x128x128xbf16>
    %4 = vector.shape_cast %3 : vector<1x128x128xbf16> to vector<128x128xbf16>
    %cst = arith.constant dense<0.000000e+00> : vector<8x128xf32>
    %5 = tpu.matmul %2, %4, %cst {dimension_numbers = #tpu.dot_dimension_numbers<[1], [0], [0], [1], [0, 0, 1, 1], [], []>} : vector<8x128xbf16>, vector<128x128xbf16>, vector<8x128xf32> -> vector<8x128xf32>
    %6 = vector.broadcast %1 : vector<1x128xf32> to vector<8x128xf32>
    %7 = arith.addf %5, %6 : vector<8x128xf32>
    %8 = math.tanh %7 : vector<8x128xf32>
    %c1 = arith.constant 1 : index
    %c0_6 = arith.constant 0 : index
    %9 = vector.load %arg2[%c1, %c0_6] : memref<3x128xf32, #tpu.memory_space<vmem>>, vector<1x128xf32>
    %10 = arith.truncf %8 : vector<8x128xf32> to vector<8x128xbf16>
    %c1_7 = arith.constant 1 : index
    %c0_8 = arith.constant 0 : index
    %c0_9 = arith.constant 0 : index
    %11 = vector.load %arg1[%c1_7, %c0_8, %c0_9] : memref<3x128x128xbf16, #tpu.memory_space<vmem>>, vector<1x128x128xbf16>
    %12 = vector.shape_cast %11 : vector<1x128x128xbf16> to vector<128x128xbf16>
    %cst_10 = arith.constant dense<0.000000e+00> : vector<8x128xf32>
    %13 = tpu.matmul %10, %12, %cst_10 {dimension_numbers = #tpu.dot_dimension_numbers<[1], [0], [0], [1], [0, 0, 1, 1], [], []>} : vector<8x128xbf16>, vector<128x128xbf16>, vector<8x128xf32> -> vector<8x128xf32>
    %14 = vector.broadcast %9 : vector<1x128xf32> to vector<8x128xf32>
    %15 = arith.addf %13, %14 : vector<8x128xf32>
    %16 = math.tanh %15 : vector<8x128xf32>
    %c0_11 = arith.constant 0 : index
    %c0_12 = arith.constant 0 : index
    %17 = vector.load %arg4[%c0_11, %c0_12] : memref<8x128xf32, #tpu.memory_space<vmem>>, vector<8x128xf32>
    tpu.vector_store %arg4[%c0_11, %c0_12], %16 {strides = array<i32>} : memref<8x128xf32, #tpu.memory_space<vmem>>, vector<8x128xf32>,
    %c2 = arith.constant 2 : index
    %c0_13 = arith.constant 0 : index
    %18 = vector.load %arg2[%c2, %c0_13] : memref<3x128xf32, #tpu.memory_space<vmem>>, vector<1x128xf32>
    %19 = arith.truncf %16 : vector<8x128xf32> to vector<8x128xbf16>
    %c2_14 = arith.constant 2 : index
    %c0_15 = arith.constant 0 : index
    %c0_16 = arith.constant 0 : index
    %20 = vector.load %arg1[%c2_14, %c0_15, %c0_16] : memref<3x128x128xbf16, #tpu.memory_space<vmem>>, vector<1x128x128xbf16>
    %21 = vector.shape_cast %20 : vector<1x128x128xbf16> to vector<128x128xbf16>
    %cst_17 = arith.constant dense<0.000000e+00> : vector<8x128xf32>
    %22 = tpu.matmul %19, %21, %cst_17 {dimension_numbers = #tpu.dot_dimension_numbers<[1], [0], [0], [1], [0, 0, 1, 1], [], []>} : vector<8x128xbf16>, vector<128x128xbf16>, vector<8x128xf32> -> vector<8x128xf32>
    %23 = vector.broadcast %18 : vector<1x128xf32> to vector<8x128xf32>
    %24 = arith.addf %22, %23 : vector<8x128xf32>
    %c0_18 = arith.constant 0 : index
    %c0_19 = arith.constant 0 : index
    %25 = vector.load %arg3[%c0_18, %c0_19] : memref<8x128xf32, #tpu.memory_space<vmem>>, vector<8x128xf32>
    tpu.vector_store %arg3[%c0_18, %c0_19], %24 {strides = array<i32>} : memref<8x128xf32, #tpu.memory_space<vmem>>, vector<8x128xf32>,
    return
  }
}

</mosaic_0001>

<bundles_post_ra>
// kernel: forward.1
= control target key start
LH: loop header
LB: loop body
LE: loop exit
PB: predicated region body
PF: predicated region fallthrough
CT: control target
= control target key end

     0   :  { %10 = vsyncpa [#allocation3], 0  ;;  %s534_s0 = inlined_call_operand.vmem [shape: f32[8,128], index: 0, kind: input, shape index: {}]   ;;  %s535_s1 = inlined_call_operand.hbm [shape: bf16[3,128,128], index: 1, kind: input, shape index: {}]   ;;  %s536_s2 = inlined_call_operand.vmem [shape: f32[3,128], index: 2, kind: input, shape index: {}]   ;;  %s537_s3 = inlined_call_operand.vmem [shape: f32[8,128], index: 3, kind: output, shape index: {0}]   ;;  %s538_s4 = inlined_call_operand.hbm [shape: f32[8,128], index: 4, kind: output, shape index: {1}]  }
   0x1   :  { %11 = vsyncpa [#allocation4], 0  ;;  %s18_s17 = sshll.u32 %s535_s1, 4  ;;  %s484_s18 = smov [#allocation2]   ;;  %s19_s17 = int_to_ptr.hbm [resolvable:$true] %s18_s17 }
   0x2   :  { %s20_s19 = sshll.u32 %s484_s18, 4  ;;  %s485_s20 = smov 64   ;;  %s21_s19 = int_to_ptr.vmem [resolvable:$true] %s20_s19 }
   0x3   :  { %s486_s21 = smov 4  }
   0x4   :  { %26 = dma.hbm_to_vmem [thread:$0]  %s19_s17, 3072, %s21_s19, [#allocation3], %s485_s20, %s485_s20, %s486_s21  }
   0x5   :  { %480 = dma.done.wait [#allocation3], 3072  }
   0x6   :  { %481 = vsyncadd [#allocation3], 4294964224  ;;  %v404_v0 = vld [vmem:[#allocation2 + $0x38] sm:$0xff]  ;;  %v403_v1 = vld [vmem:[#allocation2 + $0x30] sm:$0xff]  ;;  %s487_s26 = smov [#allocation5]   ;;  %s289_s30 = sshll.u32 %s538_s4, 4  ;;  %s290_s30 = int_to_ptr.hbm [resolvable:$true] %s289_s30 }
   0x7   :  { %101 = vmatpush.bf16.msra.mxu0 %v404_v0  ;;  %v412_v2 = vld [vmem:[#allocation2 + $0x78] sm:$0xff]  ;;  %v411_v3 = vld [vmem:[#allocation2 + $0x70] sm:$0xff]  ;;  %v402_v4 = vld [vmem:[#allocation2 + $0x28] sm:$0xff]  ;;  %s287_s27 = sshll.u32 %s487_s26, 4  ;;  %s288_s27 = int_to_ptr.vmem [resolvable:$true] %s287_s27 }
   0x8   :  { %183 = vmatpush.bf16.msra.mxu1 %v412_v2  ;;  %v410_v5 = vld [vmem:[#allocation2 + $0x68] sm:$0xff]  ;;  %v401_v6 = vld [vmem:[#allocation2 + $0x20] sm:$0xff]  ;;  %v400_v8 = vld [vmem:[#allocation2 + $0x18] sm:$0xff] }
   0x9   :  { %v409_v7 = vld [vmem:[#allocation2 + $0x60] sm:$0xff]  ;;  %v408_v9 = vld [vmem:[#allocation2 + $0x58] sm:$0xff]  ;;  %v399_v10 = vld [vmem:[#allocation2 + $0x10] sm:$0xff] }
   0xa   :  { %v398_v11 = vld [vmem:[#allocation2 + $0x8] sm:$0xff]  ;;  %v397_v12 = vld [vmem:[#allocation2] sm:$0xff]  ;;  %v407_v15 = vld [vmem:[#allocation2 + $0x50] sm:$0xff] }
   0xb   :  { %102 = vmatpush.bf16.msra.mxu0 %v403_v1  ;;  %v33_v13 = vld [vmem:[%s534_s0] sm:$0xff]  ;;  %v406_v16 = vld [vmem:[#allocation2 + $0x48] sm:$0xff]  ;;  %v420_v18 = vld [vmem:[#allocation2 + $0xb8] sm:$0xff] }
   0xc   :  { %184 = vmatpush.bf16.msra.mxu1 %v411_v3  ;;  %v35_v14 = vpack.c.bf16 %v33_v13, %v33_v13  ;;  %v405_v17 = vld [vmem:[#allocation2 + $0x40] sm:$0xff]  ;;  %266 = vmatpush.bf16.msra.mxu2 %v420_v18  ;;  %v419_v19 = vld [vmem:[#allocation2 + $0xb0] sm:$0xff]  ;;  %v418_v20 = vld [vmem:[#allocation2 + $0xa8] sm:$0xff] }
   0xd   :  { %v417_v21 = vld [vmem:[#allocation2 + $0xa0] sm:$0xff]  ;;  %v416_v22 = vld [vmem:[#allocation2 + $0x98] sm:$0xff]  ;;  %v415_v29 = vld [vmem:[#allocation2 + $0x90] sm:$0xff] }
   0xe   :  { %v425_v23 = vld [vmem:[%s536_s2] ss:$0 sm:$0xff]  ;;  %v414_v30 = vld [vmem:[#allocation2 + $0x88] sm:$0xff]  ;;  %v426_v32 = vld [vmem:[%s536_s2 + $0x1] ss:$0 sm:$0xff] }
   0xf   :  { %103 = vmatpush.bf16.msra.mxu0 %v402_v4  ;;  %v413_v31 = vld [vmem:[#allocation2 + $0x80] sm:$0xff] }
  0x10   :  { %185 = vmatpush.bf16.msra.mxu1 %v410_v5  ;;  %267 = vmatpush.bf16.msra.mxu2 %v419_v19  ;;  %v427_v38 = vld [vmem:[%s536_s2 + $0x2] ss:$0 sm:$0xff] }
  0x13   :  { %104 = vmatpush.bf16.msra.mxu0 %v401_v6 }
  0x14   :  { %186 = vmatpush.bf16.msra.mxu1 %v409_v7  ;;  %268 = vmatpush.bf16.msra.mxu2 %v418_v20 }
  0x17   :  { %105 = vmatpush.bf16.msra.mxu0 %v400_v8 }
  0x18   :  { %187 = vmatpush.bf16.msra.mxu1 %v408_v9  ;;  %269 = vmatpush.bf16.msra.mxu2 %v417_v21 }
  0x1b   :  { %106 = vmatpush.bf16.msra.mxu0 %v399_v10 }
  0x1c   :  { %188 = vmatpush.bf16.msra.mxu1 %v407_v15  ;;  %270 = vmatpush.bf16.msra.mxu2 %v416_v22 }
  0x1f   :  { %107 = vmatpush.bf16.msra.mxu0 %v398_v11 }
  0x20   :  { %189 = vmatpush.bf16.msra.mxu1 %v406_v16  ;;  %271 = vmatpush.bf16.msra.mxu2 %v415_v29 }
  0x23   :  { %108 = vmatpush.bf16.msra.mxu0 %v397_v12 }
  0x24   :  { %190 = vmatpush.bf16.msra.mxu1 %v405_v17  ;;  %272 = vmatpush.bf16.msra.mxu2 %v414_v30 }
  0x26   :  { %109 = vmatmul.bf16.vlgmr.msra.gmra.mxu0 %v35_v14 }
  0x28   :  { %273 = vmatpush.bf16.msra.mxu2 %v413_v31 }
  0xa3   :  { %v110_v24 = vpop.f32.mrf.mxu0 }
  0xa4   :  { %v111_v25 = vadd.f32 %v425_v23, %v110_v24 }
  0xa6   :  { %428 = vtanh.f32 %v111_v25 }
  0xab   :  { %v112_v26 = vpop.f32.mrf.mxu0 }
  0xac   :  { %v429_v27 = vpop.eup %428 }
  0xad   :  { %v116_v28 = vpack.c.bf16 %v429_v27, %v429_v27 }
  0xaf   :  { %191 = vmatmul.bf16.vlgmr.msra.gmra.mxu1 %v116_v28 }
 0x12c   :  { %v192_v33 = vpop.f32.mrf.mxu1 }
 0x12d   :  { %v193_v34 = vadd.f32 %v426_v32, %v192_v33 }
 0x12f   :  { %430 = vtanh.f32 %v193_v34 }
 0x134   :  { %v194_v35 = vpop.f32.mrf.mxu1 }
 0x135   :  { %v431_v36 = vpop.eup %430 }
 0x136   :  { %197 = vst [vmem:[#allocation5] sm:$0xff] %v431_v36  ;;  %v199_v37 = vpack.c.bf16 %v431_v36, %v431_v36 }
 0x137   :  { %292 = dma.vmem_to_hbm [thread:$0]  %s288_s27, 128, %s290_s30, [#allocation4]  }
 0x138   :  { %274 = vmatmul.bf16.vlgmr.msra.gmra.mxu2 %v199_v37 }
 0x1bb   :  { %v275_v39 = vpop.f32.mrf.mxu2 }
 0x1bc   :  { %v276_v40 = vadd.f32 %v427_v38, %v275_v39 }
 0x1be   :  { %279 = vst [vmem:[%s537_s3] sm:$0xff] %v276_v40 }
 0x1c3   :  { %v277_v41 = vpop.f32.mrf.mxu2 }
 0x1c4   :  { %482 = dma.done.wait [#allocation4], 128  }
 0x1c5   :  { %483 = vsyncadd [#allocation4], 4294967168 }
 0x1c6   :  { %299 = vsyncpa [#allocation3], 1 }
 0x1c7   :  { %300 = vsyncpa [#allocation4], 1 }

</bundles_post_ra>
